<compile_context>
chip_gen: v6e
topology: v6e:2x2x1
jax: 0.10.0
libtpu: 0.0.40
codegen_flags: <defaults>
</compile_context>

<pallas_src>
import functools

import jax
import jax.numpy as jnp
from jax import lax
from jax.experimental import pallas as pl
from jax.experimental.pallas import tpu as pltpu

HEAD_PAD = 128  # lane-dense head width (actor logits | value | zero padding)
NEG_BIG = -1e30  # finite "minus infinity" for masking padded softmax lanes


def ac_kernel(x_ref, w1_ref, b1_ref, wh_ref, bh_ref, out_ref, *, action_size):
    # h = ReLU(Linear(flatten_size -> node));  bf16 operands, f32 accumulation.
    h = jnp.dot(x_ref[...], w1_ref[...], preferred_element_type=jnp.float32)
    h = jnp.maximum(h + b1_ref[...], 0.0).astype(jnp.bfloat16)

    # Fused heads: one GEMM produces [TM, 128] = [actor logits (A) | value (1) | pad].
    y = jnp.dot(h, wh_ref[...], preferred_element_type=jnp.float32) + bh_ref[...]

    # Stable softmax over the first `action_size` lanes only (padding masked to -1e30).
    lane = lax.broadcasted_iota(jnp.int32, y.shape, 1)
    actor_mask = lane < action_size
    logits = jnp.where(actor_mask, y, NEG_BIG)
    m = jnp.max(logits, axis=1, keepdims=True)
    e = jnp.exp(logits - m)
    probs = e / jnp.sum(e, axis=1, keepdims=True)  # exact normalization

    # Pack [probs | value | zeros] into one lane-dense store; split in the wrapper.
    packed = jnp.where(actor_mask, probs,
                       jnp.where(lane == action_size, y, 0.0))
    out_ref[...] = packed.astype(out_ref.dtype)


def pack_params(w1, b1, wa, ba, wc, bc):
    """One-time host-side packing: fuse actor+critic heads, cast weights to bf16."""
    node = w1.shape[1]
    a = wa.shape[1]
    assert a + 1 <= HEAD_PAD
    wh = jnp.zeros((node, HEAD_PAD), jnp.float32)
    wh = wh.at[:, :a].set(wa).at[:, a:a + 1].set(wc)
    bh = jnp.zeros((1, HEAD_PAD), jnp.float32)
    bh = bh.at[:, :a].set(ba).at[:, a:a + 1].set(bc)
    return (w1.astype(jnp.bfloat16), b1.astype(jnp.float32),
            wh.astype(jnp.bfloat16), bh.astype(jnp.float32))


def _num_tensorcores():
    """Best-effort TensorCore count per device (v7x has 2, v5e/v6e have 1)."""
    try:
        kind = jax.devices()[0].device_kind.lower()
    except Exception:
        return 1
    return 2 if "v7" in kind else 1


def _pick_batch_tile(B):
    """One grid step per TensorCore (v7x megacore), capped at 2048 rows per tile."""
    steps = max(_num_tensorcores(), -(-B // 2048))
    while steps <= B // 8:
        if B % steps == 0 and (B // steps) % 8 == 0:
            return B // steps
        steps += 1
    return B


def ac_forward(x, w1_b16, b1, wh_b16, bh, action_size, *, tm=None):
    B, F = x.shape
    node = w1_b16.shape[1]
    head = wh_b16.shape[1]
    assert action_size + 1 <= head, "packed head too narrow for action_size + value"

    if x.dtype != jnp.bfloat16:  # ideally `preprocess` already emits bf16
        x = x.astype(jnp.bfloat16)

    if tm is None:
        tm = _pick_batch_tile(B)
    tm = min(tm, B)
    assert B % tm == 0 and tm % 8 == 0, "batch tile must divide B and be a multiple of 8"

    kernel = functools.partial(ac_kernel, action_size=action_size)
    out = pl.pallas_call(
        kernel,
        out_shape=jax.ShapeDtypeStruct((B, head), jnp.bfloat16),
        grid_spec=pltpu.PrefetchScalarGridSpec(
            num_scalar_prefetch=0,
            grid=(B // tm,),
            in_specs=[
                pl.BlockSpec((tm, F), lambda i: (i, 0)),        # activations stream
                pl.BlockSpec((F, node), lambda i: (0, 0)),      # weights stay resident
                pl.BlockSpec((1, node), lambda i: (0, 0)),
                pl.BlockSpec((node, head), lambda i: (0, 0)),
                pl.BlockSpec((1, head), lambda i: (0, 0)),
            ],
            out_specs=pl.BlockSpec((tm, head), lambda i: (i, 0)),
        ),
        compiler_params=pltpu.CompilerParams(
            dimension_semantics=("parallel",)),
    )(x, w1_b16, b1, wh_b16, bh)

    probs = out[:, :action_size]
    value = out[:, action_size:action_size + 1]
    return probs, value


def reference_forward_f32(x, w1, b1, wa, ba, wc, bc):
    h = jnp.maximum(x @ w1 + b1, 0.0)
    logits = h @ wa + ba
    probs = jax.nn.softmax(logits, axis=1)
    v = h @ wc + bc
    return probs, v


def reference_forward_bf16(x, w1, b1, wa, ba, wc, bc):
    # Mirrors the kernel's mixed precision (bf16 operands, f32 accumulation).
    h = jnp.dot(x.astype(jnp.bfloat16), w1.astype(jnp.bfloat16),
                preferred_element_type=jnp.float32) + b1
    h = jnp.maximum(h, 0.0).astype(jnp.bfloat16)
    logits = jnp.dot(h, wa.astype(jnp.bfloat16),
                     preferred_element_type=jnp.float32) + ba
    probs = jax.nn.softmax(logits, axis=1)
    v = jnp.dot(h, wc.astype(jnp.bfloat16),
                preferred_element_type=jnp.float32) + bc
    return probs, v


if __name__ == "__main__":
    # Shapes consistent with the module: flatten_size=32, node=256 (default),
    # action_size=4, hidden_n=1. Batch chosen so the batch grid can split on v7x.
    B, F, NODE, A = 128, 32, 256, 4

    key = jax.random.PRNGKey(0)
    kx, k1, k2, k3, k4, k5, k6 = jax.random.split(key, 7)

    x = jax.random.normal(kx, (B, F), dtype=jnp.float32)

    # Deterministic synthetic parameters (Linear layers: [in, out] layout).
    w1 = jax.random.normal(k1, (F, NODE), dtype=jnp.float32) * (1.0 / jnp.sqrt(F))
    b1 = jax.random.normal(k2, (1, NODE), dtype=jnp.float32) * 0.01
    wa = jax.random.normal(k3, (NODE, A), dtype=jnp.float32) * (1.0 / jnp.sqrt(NODE))
    ba = jax.random.normal(k4, (1, A), dtype=jnp.float32) * 0.01
    wc = jax.random.normal(k5, (NODE, 1), dtype=jnp.float32) * (1.0 / jnp.sqrt(NODE))
    bc = jax.random.normal(k6, (1, 1), dtype=jnp.float32) * 0.01

    # One-time head fusion / bf16 cast (host side, outside the hot path).
    w1_b16, b1_f32, wh_b16, bh_f32 = pack_params(w1, b1, wa, ba, wc, bc)

    # Feed bf16 activations (what `preprocess` would emit).
    x_b16 = x.astype(jnp.bfloat16)

    a_out, v_out = ac_forward(x_b16, w1_b16, b1_f32, wh_b16, bh_f32, A)
    jax.block_until_ready((a_out, v_out))

    assert a_out.shape == (B, A) and v_out.shape == (B, 1)
    a_out = a_out.astype(jnp.float32)
    v_out = v_out.astype(jnp.float32)

    # Check against a reference with matching bf16 matmul numerics (output is bf16,
    # so tolerances allow one bf16 ULP of rounding on top of the f32 math).
    a_rb, v_rb = reference_forward_bf16(x, w1, b1, wa, ba, wc, bc)
    assert jnp.allclose(a_out, a_rb, atol=5e-3, rtol=0), "actor mismatch (bf16 ref)"
    assert jnp.allclose(v_out, v_rb, atol=1e-2, rtol=1e-2), "value mismatch (bf16 ref)"

    # Loose check against the pure-f32 PyTorch-equivalent reference.
    a_rf, v_rf = reference_forward_f32(x, w1, b1, wa, ba, wc, bc)
    assert jnp.allclose(a_out, a_rf, atol=5e-2, rtol=0), "actor mismatch (f32 ref)"
    assert jnp.allclose(v_out, v_rf, atol=5e-2, rtol=5e-2), "value mismatch (f32 ref)"

    # Softmax rows sum to 1 (exact f32 normalization; slack only from the bf16 store).
    assert jnp.allclose(jnp.sum(a_out, axis=1), jnp.ones((B,)), atol=1e-2)

    print("KERNEL_OK")
</pallas_src>

<mosaic_0001>
module attributes {stable_mosaic.version = 11 : i64} {
  func.func @ac_kernel(%arg0: i32, %arg1: memref<128x32xbf16, #tpu.memory_space<vmem>>, %arg2: memref<32x256xbf16, #tpu.memory_space<vmem>>, %arg3: memref<1x256xf32, #tpu.memory_space<vmem>>, %arg4: memref<256x128xbf16, #tpu.memory_space<vmem>>, %arg5: memref<1x128xf32, #tpu.memory_space<vmem>>, %arg6: memref<128x128xbf16, #tpu.memory_space<vmem>>) attributes {dimension_semantics = [#tpu.dimension_semantics<parallel>], iteration_bounds = array<i64: 1>, scalar_prefetch = 0 : i64, scratch_operands = 0 : i64, tpu.core_type = #tpu.core_type<tc>, window_params = [{transform_indices = @transform_0, window_bounds = array<i64: 128, 32>}, {pipeline_mode = #tpu.pipeline_mode<synchronous>, transform_indices = @transform_1, window_bounds = array<i64: 32, 256>}, {pipeline_mode = #tpu.pipeline_mode<synchronous>, transform_indices = @transform_2, window_bounds = array<i64: 1, 256>}, {pipeline_mode = #tpu.pipeline_mode<synchronous>, transform_indices = @transform_3, window_bounds = array<i64: 256, 128>}, {pipeline_mode = #tpu.pipeline_mode<synchronous>, transform_indices = @transform_4, window_bounds = array<i64: 1, 128>}, {transform_indices = @transform_5, window_bounds = array<i64: 128, 128>}]} {
    %c0 = arith.constant 0 : index
    %c0_0 = arith.constant 0 : index
    %0 = vector.load %arg1[%c0, %c0_0] : memref<128x32xbf16, #tpu.memory_space<vmem>>, vector<128x32xbf16>
    %c0_1 = arith.constant 0 : index
    %c0_2 = arith.constant 0 : index
    %1 = vector.load %arg2[%c0_1, %c0_2] : memref<32x256xbf16, #tpu.memory_space<vmem>>, vector<32x256xbf16>
    %cst = arith.constant dense<0.000000e+00> : vector<128x256xf32>
    %2 = tpu.matmul %0, %1, %cst {dimension_numbers = #tpu.dot_dimension_numbers<[1], [0], [0], [1], [0, 0, 1, 1], [], []>} : vector<128x32xbf16>, vector<32x256xbf16>, vector<128x256xf32> -> vector<128x256xf32>
    %c0_3 = arith.constant 0 : index
    %c0_4 = arith.constant 0 : index
    %3 = vector.load %arg3[%c0_3, %c0_4] : memref<1x256xf32, #tpu.memory_space<vmem>>, vector<1x256xf32>
    %4 = vector.broadcast %3 : vector<1x256xf32> to vector<128x256xf32>
    %5 = arith.addf %2, %4 : vector<128x256xf32>
    %cst_5 = arith.constant 0.000000e+00 : f32
    %6 = vector.broadcast %cst_5 : f32 to vector<128x256xf32>
    %7 = arith.maximumf %5, %6 : vector<128x256xf32>
    %8 = arith.truncf %7 : vector<128x256xf32> to vector<128x256xbf16>
    %c0_6 = arith.constant 0 : index
    %c0_7 = arith.constant 0 : index
    %9 = vector.load %arg4[%c0_6, %c0_7] : memref<256x128xbf16, #tpu.memory_space<vmem>>, vector<256x128xbf16>
    %cst_8 = arith.constant dense<0.000000e+00> : vector<128x128xf32>
    %10 = tpu.matmul %8, %9, %cst_8 {dimension_numbers = #tpu.dot_dimension_numbers<[1], [0], [0], [1], [0, 0, 1, 1], [], []>} : vector<128x256xbf16>, vector<256x128xbf16>, vector<128x128xf32> -> vector<128x128xf32>
    %c0_9 = arith.constant 0 : index
    %c0_10 = arith.constant 0 : index
    %11 = vector.load %arg5[%c0_9, %c0_10] : memref<1x128xf32, #tpu.memory_space<vmem>>, vector<1x128xf32>
    %12 = vector.broadcast %11 : vector<1x128xf32> to vector<128x128xf32>
    %13 = arith.addf %10, %12 : vector<128x128xf32>
    %14 = tpu.iota {dimensions = array<i32: 1>} : vector<128x128xi32>
    %c4_i32 = arith.constant 4 : i32
    %15 = vector.broadcast %c4_i32 : i32 to vector<128x128xi32>
    %16 = arith.cmpi slt, %14, %15 : vector<128x128xi32>
    %cst_11 = arith.constant -1.000000e+30 : f32
    %17 = vector.broadcast %cst_11 : f32 to vector<128x128xf32>
    %18 = arith.select %16, %13, %17 : vector<128x128xi1>, vector<128x128xf32>
    %cst_12 = arith.constant dense<0xFF800000> : vector<128xf32>
    %19 = vector.multi_reduction <maximumf>, %18, %cst_12 [1] : vector<128x128xf32> to vector<128xf32>
    %20 = vector.shape_cast %19 : vector<128xf32> to vector<128x1xf32>
    %21 = vector.broadcast %20 : vector<128x1xf32> to vector<128x128xf32>
    %22 = arith.subf %18, %21 : vector<128x128xf32>
    %23 = math.exp %22 : vector<128x128xf32>
    %cst_13 = arith.constant dense<0.000000e+00> : vector<128xf32>
    %24 = vector.multi_reduction <add>, %23, %cst_13 [1] : vector<128x128xf32> to vector<128xf32>
    %25 = vector.shape_cast %24 : vector<128xf32> to vector<128x1xf32>
    %26 = vector.broadcast %25 : vector<128x1xf32> to vector<128x128xf32>
    %27 = arith.divf %23, %26 : vector<128x128xf32>
    %c4_i32_14 = arith.constant 4 : i32
    %28 = vector.broadcast %c4_i32_14 : i32 to vector<128x128xi32>
    %29 = arith.cmpi eq, %14, %28 : vector<128x128xi32>
    %cst_15 = arith.constant 0.000000e+00 : f32
    %30 = vector.broadcast %cst_15 : f32 to vector<128x128xf32>
    %31 = arith.select %29, %13, %30 : vector<128x128xi1>, vector<128x128xf32>
    %32 = arith.select %16, %27, %31 : vector<128x128xi1>, vector<128x128xf32>
    %33 = arith.truncf %32 : vector<128x128xf32> to vector<128x128xbf16>
    %c0_16 = arith.constant 0 : index
    %c0_17 = arith.constant 0 : index
    %34 = vector.load %arg6[%c0_16, %c0_17] : memref<128x128xbf16, #tpu.memory_space<vmem>>, vector<128x128xbf16>
    tpu.vector_store %arg6[%c0_16, %c0_17], %33 {strides = array<i32>} : memref<128x128xbf16, #tpu.memory_space<vmem>>, vector<128x128xbf16>,
    return
  }
  func.func @transform_0(%arg0: i32) -> (i32, i32) {
    %c0_i32 = arith.constant 0 : i32
    %c0_i32_0 = arith.constant 0 : i32
    return %arg0, %c0_i32 : i32, i32
  }
  func.func @transform_1(%arg0: i32) -> (i32, i32) {
    %c0_i32 = arith.constant 0 : i32
    %c0_i32_0 = arith.constant 0 : i32
    %c0_i32_1 = arith.constant 0 : i32
    return %c0_i32, %c0_i32_0 : i32, i32
  }
  func.func @transform_2(%arg0: i32) -> (i32, i32) {
    %c0_i32 = arith.constant 0 : i32
    %c0_i32_0 = arith.constant 0 : i32
    %c0_i32_1 = arith.constant 0 : i32
    return %c0_i32, %c0_i32_0 : i32, i32
  }
  func.func @transform_3(%arg0: i32) -> (i32, i32) {
    %c0_i32 = arith.constant 0 : i32
    %c0_i32_0 = arith.constant 0 : i32
    %c0_i32_1 = arith.constant 0 : i32
    return %c0_i32, %c0_i32_0 : i32, i32
  }
  func.func @transform_4(%arg0: i32) -> (i32, i32) {
    %c0_i32 = arith.constant 0 : i32
    %c0_i32_0 = arith.constant 0 : i32
    %c0_i32_1 = arith.constant 0 : i32
    return %c0_i32, %c0_i32_0 : i32, i32
  }
  func.func @transform_5(%arg0: i32) -> (i32, i32) {
    %c0_i32 = arith.constant 0 : i32
    %c0_i32_0 = arith.constant 0 : i32
    return %arg0, %c0_i32 : i32, i32
  }
}

</mosaic_0001>

<bundles_post_ra>
// kernel: tpu_custom_call.1
= control target key start
LH: loop header
LB: loop body
LE: loop exit
PB: predicated region body
PF: predicated region fallthrough
CT: control target
= control target key end

     0   :  { %10 = vsyncpa [#allocation3], 0  ;;  %s1607_s0 = inlined_call_operand.vmem [shape: bf16[128,32], index: 0, kind: input, shape index: {}]   ;;  %s1608_s1 = inlined_call_operand.vmem [shape: bf16[32,256], index: 1, kind: input, shape index: {}]   ;;  %s1609_s2 = inlined_call_operand.vmem [shape: f32[1,256], index: 2, kind: input, shape index: {}]   ;;  %s1610_s3 = inlined_call_operand.hbm [shape: bf16[256,128], index: 3, kind: input, shape index: {}]   ;;  %s1611_s4 = inlined_call_operand.vmem [shape: f32[1,128], index: 4, kind: input, shape index: {}]   ;;  %s1612_s5 = inlined_call_operand.hbm [shape: bf16[128,128], index: 5, kind: output, shape index: {}]  }
   0x1   :  { %11 = vsyncpa [#allocation4], 0  ;;  %s1178_s18 = smov [#allocation2]  }
   0x2   :  { %s23_s19 = sshll.u32 %s1178_s18, 4  ;;  %s24_s19 = int_to_ptr.vmem [resolvable:$true] %s23_s19 }
   0x3   :  { %s1142_s20 = scalar_lea.vmem %s24_s19, 2048  ;;  %p1147_p1 = scmp.lt.s32.totalorder %s24_s19, %s24_s19 }
   0x4   :  { %p1143_p0 = scmp.ne.s32.totalorder %s24_s19, %s1142_s20  ;;  %p1148_p2 = scmp.lt.s32.totalorder %s1142_s20, %s1142_s20 }
   0x6   :  { %p1149_p3 = por %p1148_p2, %p1147_p1 }
   0x8   :  { %p1150_p4 = pnand %p1149_p3, %p1143_p0 }
   0xa   :  { %1153 = shalt.err (!%p1150_p4)
}
   0xb   :  { %s1179_s21 = smov 64   ;;  %s1180_s22 = smov 4  }
   0xc   :  { %29 = dma.hbm_to_vmem [thread:$0]  %s1610_s3, 2048, %s24_s19, [#allocation3], %s1179_s21, %s1179_s21, %s1180_s22  }
   0xd   :  { %1174 = dma.done.wait [#allocation3], 2048  }
   0xe   :  { %1175 = vsyncadd [#allocation3], 4294965248  ;;  %v1181_v0 = vmov 0   ;;  %v1040_v1 = vld [vmem:[%s1608_s1 + $0x14] ss:$8 sps:$4 sm:$0xff]   ;;  %v1046_v5 = vld [vmem:[%s1607_s0] sm:$0xff]   ;;  %v58_v29 = vlaneseq }
   0xf   :  { %185 = vmatprep.mubr.bf16.mxu0 %v1181_v0  ;;  %v1042_v2 = vld [vmem:[%s1608_s1 + $0x10] ss:$8 sps:$4 sm:$0xff]   ;;  %165 = vmatprep.subr.bf16.mxu0 %v1040_v1  ;;  %v1043_v3 = vld [vmem:[%s1608_s1 + $0x4] ss:$8 sps:$4 sm:$0xff]   ;;  %v1045_v4 = vld [vmem:[%s1608_s1] ss:$8 sps:$4 sm:$0xff]  }
  0x10   :  { %166 = vmatpush1.bf16.msra.mxu0 %v1042_v2  ;;  %vm128_vm0 = vcmask 261120   ;;  %v1054_v6 = vld [vmem:[#allocation2 + $0x78] sm:$0xff]   ;;  %v1056_v8 = vld [vmem:[#allocation2 + $0x70] sm:$0xff]   ;;  %v1047_v9 = vld [vmem:[%s1607_s0 + $0x8] sm:$0xff]   ;;  %v59_v30 = vshrl.u32 %v58_v29, 7 }
  0x11   :  { %167 = vmatprep.subr.bf16.mxu0 %v1043_v3  ;;  %v1055_v7 = vld [vmem:[#allocation2 + $0x38] sm:$0xff]   ;;  %1019 = vmatprep.subr.bf16.mxu1 %v1054_v6  ;;  %v1057_v10 = vld [vmem:[#allocation2 + $0x30] sm:$0xff]   ;;  %v1058_v11 = vld [vmem:[#allocation2 + $0x68] sm:$0xff]  }
  0x12   :  { %1027 = vmatpush3.bf16.msra.mxu1 %v1055_v7  ;;  %v1059_v12 = vld [vmem:[#allocation2 + $0x28] sm:$0xff]   ;;  %v1048_v13 = vld [vmem:[%s1607_s0 + $0x10] sm:$0xff]   ;;  %v1060_v14 = vld [vmem:[#allocation2 + $0x60] sm:$0xff]   ;;  %v64_v31 = vsub.s32 1, %v59_v30  ;;  %v60_v32 = vsub.s32 0, %v59_v30 }
  0x13   :  { %1020 = vmatprep.subr.bf16.mxu1 %v1056_v8  ;;  %v1061_v15 = vld [vmem:[#allocation2 + $0x20] sm:$0xff]   ;;  %v1062_v16 = vld [vmem:[#allocation2 + $0x58] sm:$0xff]   ;;  %v1051_v20 = vld [vmem:[%s1607_s0 + $0x28] sm:$0xff]  }
  0x14   :  { %168 = vmatpush1.bf16.msra.mxu0 %v1045_v4  ;;  %v1063_v17 = vld [vmem:[#allocation2 + $0x18] sm:$0xff]   ;;  %v1050_v19 = vld [vmem:[%s1607_s0 + $0x20] sm:$0xff]   ;;  %v1052_v21 = vld [vmem:[%s1607_s0 + $0x30] sm:$0xff]  }
  0x15   :  { %955 = vmatprep.subr.bf16.mxu0 %v1054_v6  ;;  %v1049_v18 = vld [vmem:[%s1607_s0 + $0x18] sm:$0xff]   ;;  %v1064_v23 = vld [vmem:[#allocation2 + $0x50] sm:$0xff]   ;;  %v1066_v25 = vld [vmem:[#allocation2 + $0x48] sm:$0xff]  }
  0x16   :  { %1028 = vmatpush3.bf16.msra.mxu1 %v1057_v10  ;;  %v1053_v22 = vld [vmem:[%s1607_s0 + $0x38] sm:$0xff]   ;;  %v1065_v24 = vld [vmem:[#allocation2 + $0x10] sm:$0xff]   ;;  %v1067_v26 = vld [vmem:[#allocation2 + $0x8] sm:$0xff]  }
  0x17   :  { %851 = vmatmul.mubr.msk.bf16.vlgmr.msra.gmra.mxu0 %vm128_vm0, %v1046_v5  ;;  %1021 = vmatprep.subr.bf16.mxu1 %v1058_v11  ;;  %v1068_v27 = vld [vmem:[#allocation2 + $0x40] sm:$0xff]  }
  0x18   :  { %195 = vmatprep.mubr.bf16.mxu0 %v1181_v0  ;;  %956 = vmatpush3.bf16.msra.mxu0 %v1055_v7  ;;  %v1069_v28 = vld [vmem:[#allocation2] sm:$0xff]  }
  0x19   :  { %957 = vmatprep.subr.bf16.mxu0 %v1056_v8  ;;  %v56_v33 = vld [vmem:[%s1609_s2] sm:$0x3] }
  0x1a   :  { %1029 = vmatpush3.bf16.msra.mxu1 %v1059_v12  ;;  %v1267_v35 = vrot.slane %v56_v33, %v64_v31  ;;  %v1269_v36 = vrot.slane %v56_v33, %v60_v32 }
  0x1b   :  { %1022 = vmatprep.subr.bf16.mxu1 %v1060_v14 }
  0x1c   :  { %958 = vmatpush3.bf16.msra.mxu0 %v1057_v10 }
  0x1d   :  { %959 = vmatprep.subr.bf16.mxu0 %v1058_v11 }
  0x1e   :  { %1030 = vmatpush3.bf16.msra.mxu1 %v1061_v15 }
  0x1f   :  { %852 = vmatmul.mubr.msk.bf16.gmra.mxu0 %vm128_vm0, %v1047_v9  ;;  %1023 = vmatprep.subr.bf16.mxu1 %v1062_v16 }
  0x20   :  { %205 = vmatprep.mubr.bf16.mxu0 %v1181_v0  ;;  %960 = vmatpush3.bf16.msra.mxu0 %v1059_v12 }
  0x21   :  { %961 = vmatprep.subr.bf16.mxu0 %v1060_v14 }
  0x22   :  { %1031 = vmatpush3.bf16.msra.mxu1 %v1063_v17 }
  0x23   :  { %1024 = vmatprep.subr.bf16.mxu1 %v1064_v23 }
  0x24   :  { %962 = vmatpush3.bf16.msra.mxu0 %v1061_v15 }
  0x25   :  { %963 = vmatprep.subr.bf16.mxu0 %v1062_v16 }
  0x26   :  { %1032 = vmatpush3.bf16.msra.mxu1 %v1065_v24 }
  0x27   :  { %853 = vmatmul.mubr.msk.bf16.gmra.mxu0 %vm128_vm0, %v1048_v13  ;;  %1025 = vmatprep.subr.bf16.mxu1 %v1066_v25 }
  0x28   :  { %215 = vmatprep.mubr.bf16.mxu0 %v1181_v0  ;;  %964 = vmatpush3.bf16.msra.mxu0 %v1063_v17 }
  0x29   :  { %965 = vmatprep.subr.bf16.mxu0 %v1064_v23 }
  0x2a   :  { %1033 = vmatpush3.bf16.msra.mxu1 %v1067_v26 }
  0x2b   :  { %1026 = vmatprep.subr.bf16.mxu1 %v1068_v27 }
  0x2c   :  { %966 = vmatpush3.bf16.msra.mxu0 %v1065_v24 }
  0x2d   :  { %967 = vmatprep.subr.bf16.mxu0 %v1066_v25 }
  0x2e   :  { %1034 = vmatpush3.bf16.msra.mxu1 %v1069_v28 }
  0x2f   :  { %854 = vmatmul.mubr.msk.bf16.gmra.mxu0 %vm128_vm0, %v1049_v18 }
  0x30   :  { %225 = vmatprep.mubr.bf16.mxu0 %v1181_v0  ;;  %968 = vmatpush3.bf16.msra.mxu0 %v1067_v26 }
  0x31   :  { %969 = vmatprep.subr.bf16.mxu0 %v1068_v27 }
  0x34   :  { %970 = vmatpush3.bf16.msra.mxu0 %v1069_v28 }
  0x37   :  { %855 = vmatmul.mubr.msk.bf16.gmra.mxu0 %vm128_vm0, %v1050_v19 }
  0x38   :  { %235 = vmatprep.mubr.bf16.mxu0 %v1181_v0 }
  0x3f   :  { %856 = vmatmul.mubr.msk.bf16.gmra.mxu0 %vm128_vm0, %v1051_v20 }
  0x40   :  { %245 = vmatprep.mubr.bf16.mxu0 %v1181_v0 }
  0x47   :  { %857 = vmatmul.mubr.msk.bf16.gmra.mxu0 %vm128_vm0, %v1052_v21 }
  0x48   :  { %255 = vmatprep.mubr.bf16.mxu0 %v1181_v0 }
  0x4f   :  { %858 = vmatmul.mubr.msk.bf16.gmra.mxu0 %vm128_vm0, %v1053_v22 }
  0xd7   :  { %v187_v34 = vpop.f32.mrf.mxu0 }
  0xd8   :  { %v188_v41 = vadd.f32 %v187_v34, %v1269_v36 }
  0xd9   :  { %v189_v37 = vpop.f32.mrf.mxu0 }
  0xda   :  { %v190_v39 = vadd.f32 %v189_v37, %v1267_v35  ;;  %v266_v48 = vmax.f32 %v188_v41, 0.0 }
  0xdb   :  { %v191_v38 = vpop.f32.mrf.mxu0 }
  0xdc   :  { %v192_v40 = vadd.f32 %v191_v38, %v1269_v36  ;;  %v267_v46 = vmax.f32 %v190_v39, 0.0 }
  0xdd   :  { %v193_v42 = vpop.f32.mrf.mxu0 }
  0xde   :  { %v194_v43 = vadd.f32 %v193_v42, %v1267_v35  ;;  %v268_v44 = vmax.f32 %v192_v40, 0.0 }
  0xdf   :  { %v197_v45 = vpop.f32.mrf.mxu0 }
  0xe0   :  { %v269_v47 = vmax.f32 %v194_v43, 0.0  ;;  %v298_v51 = vpack.c.bf16 %v268_v44, %v266_v48  ;;  %v198_v55 = vadd.f32 %v197_v45, %v1269_v36 }
  0xe1   :  { %v199_v49 = vpop.f32.mrf.mxu0 }
  0xe2   :  { %v299_v50 = vpack.c.bf16 %v269_v47, %v267_v46  ;;  %v200_v53 = vadd.f32 %v199_v49, %v1267_v35  ;;  %v270_v62 = vmax.f32 %v198_v55, 0.0 }
  0xe3   :  { %v201_v52 = vpop.f32.mrf.mxu0 }
  0xe4   :  { %v202_v54 = vadd.f32 %v201_v52, %v1269_v36  ;;  %481 = vmatprep.mubr.bf16.mxu0 %v299_v50  ;;  %v271_v60 = vmax.f32 %v200_v53, 0.0 }
  0xe5   :  { %v203_v56 = vpop.f32.mrf.mxu0  ;;  %482 = vmatmul.mubr.bf16.vlgmr.msra.gmra.mxu0 %v298_v51 }
  0xe6   :  { %v204_v57 = vadd.f32 %v203_v56, %v1267_v35  ;;  %v272_v58 = vmax.f32 %v202_v54, 0.0 }
  0xe7   :  { %v207_v59 = vpop.f32.mrf.mxu0 }
  0xe8   :  { %v273_v61 = vmax.f32 %v204_v57, 0.0  ;;  %v300_v1 = vpack.c.bf16 %v272_v58, %v270_v62  ;;  %v208_v5 = vadd.f32 %v207_v59, %v1269_v36 }
  0xe9   :  { %v209_v63 = vpop.f32.mrf.mxu0 }
  0xea   :  { %v301_v0 = vpack.c.bf16 %v273_v61, %v271_v60  ;;  %v210_v3 = vadd.f32 %v209_v63, %v1267_v35  ;;  %v274_v12 = vmax.f32 %v208_v5, 0.0 }
  0xeb   :  { %v211_v2 = vpop.f32.mrf.mxu0 }
  0xec   :  { %v212_v4 = vadd.f32 %v211_v2, %v1269_v36  ;;  %489 = vmatprep.mubr.bf16.mxu1 %v301_v0  ;;  %v275_v10 = vmax.f32 %v210_v3, 0.0 }
  0xed   :  { %v213_v6 = vpop.f32.mrf.mxu0  ;;  %490 = vmatmul.mubr.bf16.vlgmr.msra.gmra.mxu1 %v300_v1 }
  0xee   :  { %v214_v7 = vadd.f32 %v213_v6, %v1267_v35  ;;  %v276_v8 = vmax.f32 %v212_v4, 0.0 }
  0xef   :  { %v217_v9 = vpop.f32.mrf.mxu0 }
  0xf0   :  { %v277_v11 = vmax.f32 %v214_v7, 0.0  ;;  %v302_v15 = vpack.c.bf16 %v276_v8, %v274_v12  ;;  %v218_v19 = vadd.f32 %v217_v9, %v1269_v36 }
  0xf1   :  { %v219_v13 = vpop.f32.mrf.mxu0 }
  0xf2   :  { %v303_v14 = vpack.c.bf16 %v277_v11, %v275_v10  ;;  %v220_v17 = vadd.f32 %v219_v13, %v1267_v35  ;;  %v278_v26 = vmax.f32 %v218_v19, 0.0 }
  0xf3   :  { %v221_v16 = vpop.f32.mrf.mxu0 }
  0xf4   :  { %v222_v18 = vadd.f32 %v221_v16, %v1269_v36  ;;  %497 = vmatprep.mubr.bf16.mxu1 %v303_v14  ;;  %v279_v24 = vmax.f32 %v220_v17, 0.0 }
  0xf5   :  { %v223_v20 = vpop.f32.mrf.mxu0  ;;  %498 = vmatmul.mubr.bf16.gmra.mxu1 %v302_v15 }
  0xf6   :  { %v224_v21 = vadd.f32 %v223_v20, %v1267_v35  ;;  %v280_v22 = vmax.f32 %v222_v18, 0.0 }
  0xf7   :  { %v227_v23 = vpop.f32.mrf.mxu0 }
  0xf8   :  { %v281_v25 = vmax.f32 %v224_v21, 0.0  ;;  %v304_v30 = vpack.c.bf16 %v280_v22, %v278_v26  ;;  %v228_v34 = vadd.f32 %v227_v23, %v1269_v36 }
  0xf9   :  { %v229_v27 = vpop.f32.mrf.mxu0 }
  0xfa   :  { %v305_v28 = vpack.c.bf16 %v281_v25, %v279_v24  ;;  %v230_v32 = vadd.f32 %v229_v27, %v1267_v35  ;;  %v282_v43 = vmax.f32 %v228_v34, 0.0  ;;  %v1304_v24 = vand.u32 127, %v58_v29 }
  0xfb   :  { %v231_v31 = vpop.f32.mrf.mxu0 }
  0xfc   :  { %v232_v33 = vadd.f32 %v231_v31, %v1269_v36  ;;  %505 = vmatprep.mubr.bf16.mxu1 %v305_v28  ;;  %v283_v41 = vmax.f32 %v230_v32, 0.0  ;;  %vm548_vm1 = vcmp.lt.s32.totalorder %v1304_v24, 4  ;;  %vm709_vm2 = vcmp.eq.s32.totalorder %v1304_v24, 4 }
  0xfd   :  { %v233_v37 = vpop.f32.mrf.mxu0  ;;  %506 = vmatmul.mubr.bf16.gmra.mxu1 %v304_v30 }
  0xfe   :  { %v234_v38 = vadd.f32 %v233_v37, %v1267_v35  ;;  %v284_v39 = vmax.f32 %v232_v33, 0.0 }
  0xff   :  { %v237_v40 = vpop.f32.mrf.mxu0 }
 0x100   :  { %v285_v42 = vmax.f32 %v234_v38, 0.0  ;;  %v306_v46 = vpack.c.bf16 %v284_v39, %v282_v43  ;;  %v238_v50 = vadd.f32 %v237_v40, %v1269_v36 }
 0x101   :  { %v239_v44 = vpop.f32.mrf.mxu0 }
 0x102   :  { %v307_v45 = vpack.c.bf16 %v285_v42, %v283_v41  ;;  %v240_v48 = vadd.f32 %v239_v44, %v1267_v35  ;;  %v286_v57 = vmax.f32 %v238_v50, 0.0 }
 0x103   :  { %v241_v47 = vpop.f32.mrf.mxu0 }
 0x104   :  { %v242_v49 = vadd.f32 %v241_v47, %v1269_v36  ;;  %513 = vmatprep.mubr.bf16.mxu1 %v307_v45  ;;  %v287_v55 = vmax.f32 %v240_v48, 0.0 }
 0x105   :  { %v243_v51 = vpop.f32.mrf.mxu0  ;;  %514 = vmatmul.mubr.bf16.gmra.mxu1 %v306_v46 }
 0x106   :  { %v244_v52 = vadd.f32 %v243_v51, %v1267_v35  ;;  %v288_v53 = vmax.f32 %v242_v49, 0.0 }
 0x107   :  { %v247_v54 = vpop.f32.mrf.mxu0 }
 0x108   :  { %v289_v56 = vmax.f32 %v244_v52, 0.0  ;;  %v308_v60 = vpack.c.bf16 %v288_v53, %v286_v57  ;;  %v248_v0 = vadd.f32 %v247_v54, %v1269_v36 }
 0x109   :  { %v249_v58 = vpop.f32.mrf.mxu0 }
 0x10a   :  { %v309_v59 = vpack.c.bf16 %v289_v56, %v287_v55  ;;  %v250_v62 = vadd.f32 %v249_v58, %v1267_v35  ;;  %v290_v7 = vmax.f32 %v248_v0, 0.0 }
 0x10b   :  { %v251_v61 = vpop.f32.mrf.mxu0 }
 0x10c   :  { %v252_v63 = vadd.f32 %v251_v61, %v1269_v36  ;;  %521 = vmatprep.mubr.bf16.mxu1 %v309_v59  ;;  %v291_v5 = vmax.f32 %v250_v62, 0.0 }
 0x10d   :  { %v253_v1 = vpop.f32.mrf.mxu0  ;;  %522 = vmatmul.mubr.bf16.gmra.mxu1 %v308_v60 }
 0x10e   :  { %v254_v2 = vadd.f32 %v253_v1, %v1267_v35  ;;  %v292_v3 = vmax.f32 %v252_v63, 0.0 }
 0x10f   :  { %v257_v4 = vpop.f32.mrf.mxu0 }
 0x110   :  { %v293_v6 = vmax.f32 %v254_v2, 0.0  ;;  %v310_v10 = vpack.c.bf16 %v292_v3, %v290_v7  ;;  %v258_v14 = vadd.f32 %v257_v4, %v1269_v36 }
 0x111   :  { %v259_v8 = vpop.f32.mrf.mxu0 }
 0x112   :  { %v311_v9 = vpack.c.bf16 %v293_v6, %v291_v5  ;;  %v260_v12 = vadd.f32 %v259_v8, %v1267_v35  ;;  %v294_v20 = vmax.f32 %v258_v14, 0.0 }
 0x113   :  { %v261_v11 = vpop.f32.mrf.mxu0 }
 0x114   :  { %v262_v13 = vadd.f32 %v261_v11, %v1269_v36  ;;  %529 = vmatprep.mubr.bf16.mxu1 %v311_v9  ;;  %v295_v18 = vmax.f32 %v260_v12, 0.0  ;;  %v1309_v36 = vld [vmem:[%s1611_s4] ss:$0 sm:$0xff]  ;;  %s1182_s4 = smov [#allocation5]  }
 0x115   :  { %v263_v15 = vpop.f32.mrf.mxu0  ;;  %530 = vmatmul.mubr.bf16.gmra.mxu1 %v310_v10  ;;  %s827_s26 = sshll.u32 %s1182_s4, 4  ;;  %s828_s26 = int_to_ptr.vmem [resolvable:$true] %s827_s26 }
 0x116   :  { %v264_v16 = vadd.f32 %v263_v15, %v1267_v35  ;;  %v296_v17 = vmax.f32 %v262_v13, 0.0  ;;  %s1154_s27 = scalar_lea.vmem %s828_s26, 1024  ;;  %p1159_p6 = scmp.lt.s32.totalorder %s828_s26, %s828_s26 }
 0x117   :  { %p1155_p5 = scmp.ne.s32.totalorder %s828_s26, %s1154_s27  ;;  %p1160_p7 = scmp.lt.s32.totalorder %s1154_s27, %s1154_s27 }
 0x118   :  { %v297_v19 = vmax.f32 %v264_v16, 0.0  ;;  %v312_v22 = vpack.c.bf16 %v296_v17, %v294_v20 }
 0x119   :  { %p1161_p8 = por %p1160_p7, %p1159_p6 }
 0x11a   :  { %v313_v21 = vpack.c.bf16 %v297_v19, %v295_v18 }
 0x11b   :  { %p1162_p9 = pnand %p1161_p8, %p1155_p5 }
 0x11c   :  { %537 = vmatprep.mubr.bf16.mxu1 %v313_v21 }
 0x11d   :  { %538 = vmatmul.mubr.bf16.gmra.mxu1 %v312_v22 }
 0x1a5   :  { %v971_v23 = vpop.f32.mrf.mxu0 }
 0x1a7   :  { %v972_v25 = vpop.f32.mrf.mxu0 }
 0x1a8   :  { %v973_v26 = vadd.f32 %v972_v25, %v971_v23 }
 0x1a9   :  { %v974_v35 = vpop.f32.mrf.mxu0 }
 0x1aa   :  { %v484_v27 = vadd.f32 %v973_v26, %v1309_v36 }
 0x1ab   :  { %v975_v28 = vpop.f32.mrf.mxu0 }
 0x1ac   :  { %v976_v30 = vadd.f32 %v975_v28, %v974_v35  ;;  %v1316_v29 = vsel %vm548_vm1, %v484_v27, -1e+30  ;;  %v1320_v31 = vsel %vm709_vm2, %v484_v27, 0.0 }
 0x1ad   :  { %v977_v32 = vpop.f32.mrf.mxu1  ;;  %565 = vmax.xlane.f32.xlu0 %v1316_v29 }
 0x1ae   :  { %v487_v33 = vadd.f32 %v976_v30, %v1309_v36 }
 0x1af   :  { %v978_v34 = vpop.f32.mrf.mxu1 }
 0x1b0   :  { %v979_v37 = vadd.f32 %v978_v34, %v977_v32  ;;  %v1326_v38 = vsel %vm548_vm1, %v487_v33, -1e+30  ;;  %v1330_v39 = vsel %vm709_vm2, %v487_v33, 0.0 }
 0x1b1   :  { %v980_v40 = vpop.f32.mrf.mxu1  ;;  %567 = vmax.xlane.f32.xlu0 %v1326_v38 }
 0x1b2   :  { %v492_v41 = vadd.f32 %v979_v37, %v1309_v36 }
 0x1b3   :  { %v981_v42 = vpop.f32.mrf.mxu1 }
 0x1b4   :  { %v982_v43 = vadd.f32 %v981_v42, %v980_v40  ;;  %v1336_v44 = vsel %vm548_vm1, %v492_v41, -1e+30  ;;  %v1340_v45 = vsel %vm709_vm2, %v492_v41, 0.0 }
 0x1b5   :  { %v983_v46 = vpop.f32.mrf.mxu1  ;;  %569 = vmax.xlane.f32.xlu1 %v1336_v44 }
 0x1b6   :  { %v495_v47 = vadd.f32 %v982_v43, %v1309_v36 }
 0x1b7   :  { %v984_v48 = vpop.f32.mrf.mxu1 }
 0x1b8   :  { %v985_v49 = vadd.f32 %v984_v48, %v983_v46  ;;  %v1346_v50 = vsel %vm548_vm1, %v495_v47, -1e+30  ;;  %v1350_v51 = vsel %vm709_vm2, %v495_v47, 0.0 }
 0x1b9   :  { %v986_v52 = vpop.f32.mrf.mxu1  ;;  %571 = vmax.xlane.f32.xlu1 %v1346_v50 }
 0x1ba   :  { %v500_v53 = vadd.f32 %v985_v49, %v1309_v36 }
 0x1bb   :  { %v987_v54 = vpop.f32.mrf.mxu1 }
 0x1bc   :  { %v988_v55 = vadd.f32 %v987_v54, %v986_v52  ;;  %v1356_v56 = vsel %vm548_vm1, %v500_v53, -1e+30  ;;  %v1360_v57 = vsel %vm709_vm2, %v500_v53, 0.0 }
 0x1bd   :  { %v989_v58 = vpop.f32.mrf.mxu1  ;;  %573 = vmax.xlane.f32.xlu0 %v1356_v56 }
 0x1be   :  { %v503_v59 = vadd.f32 %v988_v55, %v1309_v36 }
 0x1bf   :  { %v990_v60 = vpop.f32.mrf.mxu1 }
 0x1c0   :  { %v991_v61 = vadd.f32 %v990_v60, %v989_v58  ;;  %v1366_v62 = vsel %vm548_vm1, %v503_v59, -1e+30  ;;  %v1370_v63 = vsel %vm709_vm2, %v503_v59, 0.0 }
 0x1c1   :  { %v992_v0 = vpop.f32.mrf.mxu1  ;;  %575 = vmax.xlane.f32.xlu1 %v1366_v62 }
 0x1c2   :  { %v508_v1 = vadd.f32 %v991_v61, %v1309_v36 }
 0x1c3   :  { %v993_v2 = vpop.f32.mrf.mxu1 }
 0x1c4   :  { %v994_v3 = vadd.f32 %v993_v2, %v992_v0  ;;  %v1376_v4 = vsel %vm548_vm1, %v508_v1, -1e+30  ;;  %v1380_v5 = vsel %vm709_vm2, %v508_v1, 0.0 }
 0x1c5   :  { %v995_v6 = vpop.f32.mrf.mxu1  ;;  %577 = vmax.xlane.f32.xlu0 %v1376_v4 }
 0x1c6   :  { %v511_v7 = vadd.f32 %v994_v3, %v1309_v36 }
 0x1c7   :  { %v996_v8 = vpop.f32.mrf.mxu1 }
 0x1c8   :  { %v997_v9 = vadd.f32 %v996_v8, %v995_v6  ;;  %v1386_v10 = vsel %vm548_vm1, %v511_v7, -1e+30  ;;  %v1390_v11 = vsel %vm709_vm2, %v511_v7, 0.0 }
 0x1c9   :  { %v998_v12 = vpop.f32.mrf.mxu1  ;;  %579 = vmax.xlane.f32.xlu1 %v1386_v10 }
 0x1ca   :  { %v516_v13 = vadd.f32 %v997_v9, %v1309_v36 }
 0x1cb   :  { %v999_v14 = vpop.f32.mrf.mxu1 }
 0x1cc   :  { %v1000_v15 = vadd.f32 %v999_v14, %v998_v12  ;;  %v1396_v16 = vsel %vm548_vm1, %v516_v13, -1e+30  ;;  %v1400_v17 = vsel %vm709_vm2, %v516_v13, 0.0 }
 0x1cd   :  { %v1001_v18 = vpop.f32.mrf.mxu1  ;;  %581 = vmax.xlane.f32.xlu0 %v1396_v16 }
 0x1ce   :  { %v519_v19 = vadd.f32 %v1000_v15, %v1309_v36 }
 0x1cf   :  { %v1002_v20 = vpop.f32.mrf.mxu1 }
 0x1d0   :  { %v1003_v21 = vadd.f32 %v1002_v20, %v1001_v18  ;;  %v1406_v22 = vsel %vm548_vm1, %v519_v19, -1e+30  ;;  %v1410_v23 = vsel %vm709_vm2, %v519_v19, 0.0 }
 0x1d1   :  { %v1004_v25 = vpop.f32.mrf.mxu1  ;;  %583 = vmax.xlane.f32.xlu1 %v1406_v22 }
 0x1d2   :  { %v524_v26 = vadd.f32 %v1003_v21, %v1309_v36 }
 0x1d3   :  { %v1005_v35 = vpop.f32.mrf.mxu1 }
 0x1d4   :  { %v1006_v27 = vadd.f32 %v1005_v35, %v1004_v25  ;;  %v1416_v28 = vsel %vm548_vm1, %v524_v26, -1e+30  ;;  %v1420_v30 = vsel %vm709_vm2, %v524_v26, 0.0 }
 0x1d5   :  { %v1007_v32 = vpop.f32.mrf.mxu1  ;;  %585 = vmax.xlane.f32.xlu0 %v1416_v28 }
 0x1d6   :  { %v527_v33 = vadd.f32 %v1006_v27, %v1309_v36 }
 0x1d7   :  { %v1008_v34 = vpop.f32.mrf.mxu1 }
 0x1d8   :  { %v1009_v37 = vadd.f32 %v1008_v34, %v1007_v32  ;;  %v1426_v40 = vsel %vm548_vm1, %v527_v33, -1e+30  ;;  %v1430_v41 = vsel %vm709_vm2, %v527_v33, 0.0 }
 0x1d9   :  { %v1010_v42 = vpop.f32.mrf.mxu1  ;;  %587 = vmax.xlane.f32.xlu1 %v1426_v40 }
 0x1da   :  { %v532_v43 = vadd.f32 %v1009_v37, %v1309_v36 }
 0x1db   :  { %v1011_v46 = vpop.f32.mrf.mxu1 }
 0x1dc   :  { %v1012_v47 = vadd.f32 %v1011_v46, %v1010_v42  ;;  %v1436_v48 = vsel %vm548_vm1, %v532_v43, -1e+30  ;;  %v1440_v49 = vsel %vm709_vm2, %v532_v43, 0.0 }
 0x1dd   :  { %v1013_v52 = vpop.f32.mrf.mxu1  ;;  %589 = vmax.xlane.f32.xlu0 %v1436_v48 }
 0x1de   :  { %v535_v53 = vadd.f32 %v1012_v47, %v1309_v36 }
 0x1df   :  { %v1014_v54 = vpop.f32.mrf.mxu1 }
 0x1e0   :  { %v1015_v55 = vadd.f32 %v1014_v54, %v1013_v52  ;;  %v1446_v58 = vsel %vm548_vm1, %v535_v53, -1e+30  ;;  %v1450_v59 = vsel %vm709_vm2, %v535_v53, 0.0 }
 0x1e1   :  { %v1016_v60 = vpop.f32.mrf.mxu1  ;;  %591 = vmax.xlane.f32.xlu1 %v1446_v58 }
 0x1e2   :  { %v540_v61 = vadd.f32 %v1015_v55, %v1309_v36 }
 0x1e3   :  { %v1017_v0 = vpop.f32.mrf.mxu1 }
 0x1e4   :  { %v1018_v1 = vadd.f32 %v1017_v0, %v1016_v60  ;;  %v1456_v2 = vsel %vm548_vm1, %v540_v61, -1e+30  ;;  %v1460_v3 = vsel %vm709_vm2, %v540_v61, 0.0 }
 0x1e5   :  { %593 = vmax.xlane.f32.xlu0 %v1456_v2 }
 0x1e6   :  { %v543_v6 = vadd.f32 %v1018_v1, %v1309_v36 }
 0x1e8   :  { %v1466_v7 = vsel %vm548_vm1, %v543_v6, -1e+30  ;;  %v1470_v8 = vsel %vm709_vm2, %v543_v6, 0.0 }
 0x1e9   :  { %595 = vmax.xlane.f32.xlu1 %v1466_v7 }
 0x236   :  { %v566_v9 = vpop.xlane.xlu0 %565 }
 0x237   :  { %v597_v12 = vsub.f32 %v1316_v29, %v566_v9 }
 0x239   :  { %v613_v13 = vmul.f32 1.442695, %v597_v12 }
 0x23a   :  { %v568_v14 = vpop.xlane.xlu0 %567 }
 0x23b   :  { %1070 = vpow2.f32 %v613_v13  ;;  %v598_v15 = vsub.f32 %v1326_v38, %v568_v14 }
 0x23d   :  { %v615_v18 = vmul.f32 1.442695, %v598_v15 }
 0x23e   :  { %v570_v36 = vpop.xlane.xlu1 %569 }
 0x23f   :  { %1072 = vpow2.f32 %v615_v18  ;;  %v599_v19 = vsub.f32 %v1336_v44, %v570_v36 }
 0x241   :  { %v617_v20 = vmul.f32 1.442695, %v599_v19 }
 0x242   :  { %v572_v21 = vpop.xlane.xlu1 %571 }
 0x243   :  { %1074 = vpow2.f32 %v617_v20  ;;  %v600_v25 = vsub.f32 %v1346_v50, %v572_v21 }
 0x245   :  { %v619_v26 = vmul.f32 1.442695, %v600_v25 }
 0x246   :  { %v574_v35 = vpop.xlane.xlu0 %573 }
 0x247   :  { %1076 = vpow2.f32 %v619_v26  ;;  %v601_v29 = vsub.f32 %v1356_v56, %v574_v35 }
 0x248   :  { %v1478_v27 = vpop.eup %1070 }
 0x249   :  { %v621_v32 = vmul.f32 1.442695, %v601_v29  ;;  %645 = vadd.xlane.f32.xlu0 %v1478_v27 }
 0x24a   :  { %v576_v38 = vpop.xlane.xlu1 %575 }
 0x24b   :  { %1078 = vpow2.f32 %v621_v32  ;;  %v602_v33 = vsub.f32 %v1366_v62, %v576_v38 }
 0x24c   :  { %v1482_v44 = vpop.eup %1072 }
 0x24d   :  { %v623_v34 = vmul.f32 1.442695, %v602_v33  ;;  %647 = vadd.xlane.f32.xlu1 %v1482_v44 }
 0x24e   :  { %v578_v50 = vpop.xlane.xlu0 %577 }
 0x24f   :  { %1080 = vpow2.f32 %v623_v34  ;;  %v603_v37 = vsub.f32 %v1376_v4, %v578_v50 }
 0x250   :  { %v1486_v42 = vpop.eup %1074 }
 0x251   :  { %v625_v56 = vmul.f32 1.442695, %v603_v37  ;;  %649 = vadd.xlane.f32.xlu0 %v1486_v42 }
 0x252   :  { %v580_v43 = vpop.xlane.xlu1 %579 }
 0x253   :  { %1082 = vpow2.f32 %v625_v56  ;;  %v604_v46 = vsub.f32 %v1386_v10, %v580_v43 }
 0x254   :  { %v1490_v47 = vpop.eup %1076 }
 0x255   :  { %v627_v62 = vmul.f32 1.442695, %v604_v46  ;;  %651 = vadd.xlane.f32.xlu1 %v1490_v47 }
 0x256   :  { %v582_v52 = vpop.xlane.xlu0 %581 }
 0x257   :  { %1084 = vpow2.f32 %v627_v62  ;;  %v605_v53 = vsub.f32 %v1396_v16, %v582_v52 }
 0x258   :  { %v1494_v54 = vpop.eup %1078 }
 0x259   :  { %v629_v4 = vmul.f32 1.442695, %v605_v53  ;;  %653 = vadd.xlane.f32.xlu0 %v1494_v54 }
 0x25a   :  { %v584_v55 = vpop.xlane.xlu1 %583 }
 0x25b   :  { %1086 = vpow2.f32 %v629_v4  ;;  %v606_v60 = vsub.f32 %v1406_v22, %v584_v55 }
 0x25c   :  { %v1498_v61 = vpop.eup %1080 }
 0x25d   :  { %v631_v10 = vmul.f32 1.442695, %v606_v60  ;;  %655 = vadd.xlane.f32.xlu1 %v1498_v61 }
 0x25e   :  { %v586_v0 = vpop.xlane.xlu0 %585 }
 0x25f   :  { %1088 = vpow2.f32 %v631_v10  ;;  %v607_v1 = vsub.f32 %v1416_v28, %v586_v0 }
 0x260   :  { %v1502_v6 = vpop.eup %1082 }
 0x261   :  { %v633_v16 = vmul.f32 1.442695, %v607_v1  ;;  %657 = vadd.xlane.f32.xlu0 %v1502_v6 }
 0x262   :  { %v588_v9 = vpop.xlane.xlu1 %587 }
 0x263   :  { %1090 = vpow2.f32 %v633_v16  ;;  %v608_v12 = vsub.f32 %v1426_v40, %v588_v9 }
 0x264   :  { %v1506_v13 = vpop.eup %1084 }
 0x265   :  { %v635_v22 = vmul.f32 1.442695, %v608_v12  ;;  %659 = vadd.xlane.f32.xlu1 %v1506_v13 }
 0x266   :  { %v590_v14 = vpop.xlane.xlu0 %589 }
 0x267   :  { %1092 = vpow2.f32 %v635_v22  ;;  %v609_v15 = vsub.f32 %v1436_v48, %v590_v14 }
 0x268   :  { %v1510_v18 = vpop.eup %1086 }
 0x269   :  { %v637_v28 = vmul.f32 1.442695, %v609_v15  ;;  %661 = vadd.xlane.f32.xlu0 %v1510_v18 }
 0x26a   :  { %v592_v36 = vpop.xlane.xlu1 %591 }
 0x26b   :  { %1094 = vpow2.f32 %v637_v28  ;;  %v610_v19 = vsub.f32 %v1446_v58, %v592_v36 }
 0x26c   :  { %v1514_v20 = vpop.eup %1088 }
 0x26d   :  { %v639_v40 = vmul.f32 1.442695, %v610_v19  ;;  %663 = vadd.xlane.f32.xlu1 %v1514_v20 }
 0x26e   :  { %v594_v21 = vpop.xlane.xlu0 %593 }
 0x26f   :  { %1096 = vpow2.f32 %v639_v40  ;;  %v611_v25 = vsub.f32 %v1456_v2, %v594_v21 }
 0x270   :  { %v1518_v26 = vpop.eup %1090 }
 0x271   :  { %v641_v48 = vmul.f32 1.442695, %v611_v25  ;;  %665 = vadd.xlane.f32.xlu0 %v1518_v26 }
 0x272   :  { %v596_v35 = vpop.xlane.xlu1 %595 }
 0x273   :  { %1098 = vpow2.f32 %v641_v48  ;;  %v612_v29 = vsub.f32 %v1466_v7, %v596_v35 }
 0x274   :  { %v1522_v32 = vpop.eup %1092 }
 0x275   :  { %v643_v58 = vmul.f32 1.442695, %v612_v29  ;;  %667 = vadd.xlane.f32.xlu1 %v1522_v32 }
 0x277   :  { %1100 = vpow2.f32 %v643_v58 }
 0x278   :  { %v1525_v38 = vpop.eup %1094 }
 0x279   :  { %669 = vadd.xlane.f32.xlu0 %v1525_v38 }
 0x27c   :  { %v1528_v2 = vpop.eup %1096 }
 0x27d   :  { %671 = vadd.xlane.f32.xlu1 %v1528_v2 }
 0x280   :  { %v1531_v33 = vpop.eup %1098 }
 0x281   :  { %673 = vadd.xlane.f32.xlu0 %v1531_v33 }
 0x284   :  { %v1534_v34 = vpop.eup %1100 }
 0x285   :  { %675 = vadd.xlane.f32.xlu1 %v1534_v34 }
 0x2d2   :  { %v646_v7 = vpop.xlane.xlu0 %645 }
 0x2d3   :  { %1102 = vrcp.f32 %v646_v7 }
 0x2d6   :  { %v648_v50 = vpop.xlane.xlu1 %647 }
 0x2d7   :  { %1104 = vrcp.f32 %v648_v50 }
 0x2da   :  { %v650_v37 = vpop.xlane.xlu0 %649 }
 0x2db   :  { %1106 = vrcp.f32 %v650_v37 }
 0x2de   :  { %v652_v56 = vpop.xlane.xlu1 %651 }
 0x2df   :  { %1108 = vrcp.f32 %v652_v56 }
 0x2e0   :  { %v1103_v43 = vpop.eup %1102 }
 0x2e1   :  { %v678_v62 = vmul.f32 %v1103_v43, %v1478_v27 }
 0x2e2   :  { %v654_v46 = vpop.xlane.xlu0 %653 }
 0x2e3   :  { %1110 = vrcp.f32 %v654_v46  ;;  %v726_v55 = vsel %vm548_vm1, %v678_v62, %v1320_v31 }
 0x2e4   :  { %v1105_v52 = vpop.eup %1104 }
 0x2e5   :  { %v680_v53 = vmul.f32 %v1105_v52, %v1482_v44 }
 0x2e6   :  { %v656_v4 = vpop.xlane.xlu1 %655 }
 0x2e7   :  { %v727_v60 = vsel %vm548_vm1, %v680_v53, %v1330_v39  ;;  %1112 = vrcp.f32 %v656_v4 }
 0x2e8   :  { %v1107_v10 = vpop.eup %1106  ;;  %v911_v0 = vpack.c.bf16 %v727_v60, %v726_v55 }
 0x2e9   :  { %v682_v27 = vmul.f32 %v1107_v10, %v1486_v42 }
 0x2ea   :  { %912 = vst [vmem:[#allocation5] sm:$0xff] %v911_v0   ;;  %v658_v1 = vpop.xlane.xlu0 %657 }
 0x2eb   :  { %1114 = vrcp.f32 %v658_v1  ;;  %v728_v31 = vsel %vm548_vm1, %v682_v27, %v1340_v45 }
 0x2ec   :  { %v1109_v16 = vpop.eup %1108 }
 0x2ed   :  { %v684_v44 = vmul.f32 %v1109_v16, %v1490_v47 }
 0x2ee   :  { %v660_v9 = vpop.xlane.xlu1 %659 }
 0x2ef   :  { %v729_v39 = vsel %vm548_vm1, %v684_v44, %v1350_v51  ;;  %1116 = vrcp.f32 %v660_v9 }
 0x2f0   :  { %v1111_v12 = vpop.eup %1110  ;;  %v916_v22 = vpack.c.bf16 %v729_v39, %v728_v31 }
 0x2f1   :  { %v686_v42 = vmul.f32 %v1111_v12, %v1494_v54 }
 0x2f2   :  { %948 = vst [vmem:[#allocation5 + $0x8] sm:$0xff] %v916_v22   ;;  %v662_v14 = vpop.xlane.xlu0 %661 }
 0x2f3   :  { %1118 = vrcp.f32 %v662_v14  ;;  %v730_v45 = vsel %vm548_vm1, %v686_v42, %v1360_v57 }
 0x2f4   :  { %v1113_v15 = vpop.eup %1112 }
 0x2f5   :  { %v688_v47 = vmul.f32 %v1113_v15, %v1498_v61 }
 0x2f6   :  { %v664_v28 = vpop.xlane.xlu1 %663 }
 0x2f7   :  { %v731_v51 = vsel %vm548_vm1, %v688_v47, %v1370_v63  ;;  %1120 = vrcp.f32 %v664_v28 }
 0x2f8   :  { %v1115_v36 = vpop.eup %1114  ;;  %v921_v19 = vpack.c.bf16 %v731_v51, %v730_v45 }
 0x2f9   :  { %v690_v54 = vmul.f32 %v1115_v36, %v1502_v6 }
 0x2fa   :  { %949 = vst [vmem:[#allocation5 + $0x10] sm:$0xff] %v921_v19   ;;  %v666_v40 = vpop.xlane.xlu0 %665 }
 0x2fb   :  { %1122 = vrcp.f32 %v666_v40  ;;  %v732_v57 = vsel %vm548_vm1, %v690_v54, %v1380_v5 }
 0x2fc   :  { %v1117_v21 = vpop.eup %1116 }
 0x2fd   :  { %v692_v61 = vmul.f32 %v1117_v21, %v1506_v13 }
 0x2fe   :  { %v668_v25 = vpop.xlane.xlu1 %667 }
 0x2ff   :  { %v733_v63 = vsel %vm548_vm1, %v692_v61, %v1390_v11  ;;  %1124 = vrcp.f32 %v668_v25 }
 0x300   :  { %v1119_v48 = vpop.eup %1118  ;;  %v926_v35 = vpack.c.bf16 %v733_v63, %v732_v57 }
 0x301   :  { %v694_v6 = vmul.f32 %v1119_v48, %v1510_v18 }
 0x302   :  { %950 = vst [vmem:[#allocation5 + $0x18] sm:$0xff] %v926_v35   ;;  %v670_v29 = vpop.xlane.xlu0 %669 }
 0x303   :  { %1126 = vrcp.f32 %v670_v29  ;;  %v734_v5 = vsel %vm548_vm1, %v694_v6, %v1400_v17 }
 0x304   :  { %v1121_v58 = vpop.eup %1120 }
 0x305   :  { %v696_v13 = vmul.f32 %v1121_v58, %v1514_v20 }
 0x306   :  { %v672_v7 = vpop.xlane.xlu1 %671 }
 0x307   :  { %v735_v11 = vsel %vm548_vm1, %v696_v13, %v1410_v23  ;;  %1128 = vrcp.f32 %v672_v7 }
 0x308   :  { %v1123_v50 = vpop.eup %1122  ;;  %v931_v37 = vpack.c.bf16 %v735_v11, %v734_v5 }
 0x309   :  { %v698_v18 = vmul.f32 %v1123_v50, %v1518_v26 }
 0x30a   :  { %951 = vst [vmem:[#allocation5 + $0x20] sm:$0xff] %v931_v37   ;;  %v674_v56 = vpop.xlane.xlu0 %673 }
 0x30b   :  { %1130 = vrcp.f32 %v674_v56  ;;  %v736_v17 = vsel %vm548_vm1, %v698_v18, %v1420_v30 }
 0x30c   :  { %v1125_v43 = vpop.eup %1124 }
 0x30d   :  { %v700_v20 = vmul.f32 %v1125_v43, %v1522_v32 }
 0x30e   :  { %v676_v46 = vpop.xlane.xlu1 %675 }
 0x30f   :  { %v737_v23 = vsel %vm548_vm1, %v700_v20, %v1430_v41  ;;  %1132 = vrcp.f32 %v676_v46 }
 0x310   :  { %v1127_v62 = vpop.eup %1126  ;;  %v936_v52 = vpack.c.bf16 %v737_v23, %v736_v17 }
 0x311   :  { %v702_v53 = vmul.f32 %v1127_v62, %v1525_v38 }
 0x312   :  { %952 = vst [vmem:[#allocation5 + $0x28] sm:$0xff] %v936_v52  }
 0x313   :  { %v738_v32 = vsel %vm548_vm1, %v702_v53, %v1440_v49 }
 0x314   :  { %v1129_v26 = vpop.eup %1128 }
 0x315   :  { %v704_v4 = vmul.f32 %v1129_v26, %v1528_v2 }
 0x317   :  { %v739_v30 = vsel %vm548_vm1, %v704_v4, %v1450_v59 }
 0x318   :  { %v1131_v55 = vpop.eup %1130  ;;  %v941_v60 = vpack.c.bf16 %v739_v30, %v738_v32 }
 0x319   :  { %v706_v41 = vmul.f32 %v1131_v55, %v1531_v33 }
 0x31a   :  { %953 = vst [vmem:[#allocation5 + $0x30] sm:$0xff] %v941_v60  }
 0x31b   :  { %v740_v38 = vsel %vm548_vm1, %v706_v41, %v1460_v3 }
 0x31c   :  { %v1133_v10 = vpop.eup %1132 }
 0x31d   :  { %v708_v0 = vmul.f32 %v1133_v10, %v1534_v34 }
 0x31f   :  { %v741_v49 = vsel %vm548_vm1, %v708_v0, %v1470_v8 }
 0x320   :  { %v946_v2 = vpack.c.bf16 %v741_v49, %v740_v38 }
 0x322   :  { %954 = vst [vmem:[#allocation5 + $0x38] sm:$0xff] %v946_v2  }
 0x323   :  { %1165 = shalt.err (!%p1162_p9)
}
 0x324   :  { %833 = dma.vmem_to_hbm [thread:$0]  %s828_s26, 1024, %s1612_s5, [#allocation4], %s1179_s21, %s1179_s21, %s1180_s22  }
 0x325   :  { %1176 = dma.done.wait [#allocation4], 1024  }
 0x326   :  { %1177 = vsyncadd [#allocation4], 4294966272 }
 0x327   :  { %837 = vsyncpa [#allocation3], 1 }
 0x328   :  { %838 = vsyncpa [#allocation4], 1 }

</bundles_post_ra>
